<compile_context>
chip_gen: v6e
topology: v6e:2x2x1
jax: 0.10.0
libtpu: 0.0.40
codegen_flags: <defaults>
</compile_context>

<pallas_src>
import jax
import jax.numpy as jnp
from jax.experimental import pallas as pl
from jax.experimental.pallas import tpu as pltpu

_LANES = 128
_SUBLANES = 8
_MIN_PALLAS_BYTES = 1 << 20            # below this, plain jnp.arctan is faster
_VMEM_LIMIT_BYTES = 48 * 1024 * 1024   # safe on v5e/v6e (128 MiB) and v7x (64 MiB/TC)

# --- Cephes-style atan approximation constants (float32 accuracy) -----------
_TAN_3PI_8 = 2.414213562373095       # tan(3*pi/8)
_TAN_PI_8 = 0.41421356237309503      # tan(pi/8)
_PI_2 = 1.5707963267948966
_PI_4 = 0.7853981633974483
_C1 = -3.33329491539e-1              # atan(t) ~ t + t^3*P(t^2), |t| <= tan(pi/8)
_C2 = 1.99777106478e-1
_C3 = -1.38776856032e-1
_C4 = 8.05374449538e-2


def _atan_f32(x):
    """Elementwise arctan in f32: range reduction + odd minimax polynomial."""
    ax = jnp.minimum(jnp.abs(x), 1e38)        # clamp +/-inf -> huge finite (atan ~ pi/2)
    big = ax > _TAN_3PI_8                     # |x| > tan(3pi/8): pi/2 - atan(1/|x|)
    mid = ax > _TAN_PI_8                      # tan(pi/8) < |x| <= tan(3pi/8): pi/4 + atan((|x|-1)/(|x|+1))
    num = jnp.where(big, -1.0, jnp.where(mid, ax - 1.0, ax))
    den = jnp.where(big, ax, jnp.where(mid, ax + 1.0, 1.0))     # den >= 1 always
    # EUP-seeded reciprocal + two Newton steps (cheap on the VALU, ~f32 accurate).
    r = pl.reciprocal(den, approx=True)
    r = r * (2.0 - den * r)
    r = r * (2.0 - den * r)
    t = num * r                                # reduced argument, |t| <= tan(pi/8)
    off = jnp.where(big, _PI_2, jnp.where(mid, _PI_4, 0.0))
    z = t * t
    p = (((_C4 * z + _C3) * z + _C2) * z + _C1) * z * t + t
    y = off + p
    y = jnp.where(x < 0.0, -y, y)              # restore sign
    return jnp.where(jnp.isnan(x), x, y)       # NaN passthrough (matches torch.atan)


def _arctan_kernel(x_ref, o_ref):
    # Single upcast to f32 (v5e has no bf16 VALU/EUP), compute, single downcast.
    x = x_ref[...].astype(jnp.float32)
    o_ref[...] = _atan_f32(x).astype(o_ref.dtype)


def arctan_pallas(x: jax.Array, *, tile_rows: int = 4096,
                  force_pallas: bool = False) -> jax.Array:
    """Elementwise arctan via a Pallas TPU kernel (any shape; float dtypes)."""
    orig_shape = x.shape
    orig_dtype = x.dtype
    n = x.size

    pallas_dtypes = (jnp.dtype(jnp.float32), jnp.dtype(jnp.bfloat16),
                     jnp.dtype(jnp.float16))
    if n == 0 or orig_dtype not in pallas_dtypes:
        return jnp.arctan(x)                       # unsupported dtype / empty: XLA path
    if (not force_pallas) and n * orig_dtype.itemsize < _MIN_PALLAS_BYTES:
        return jnp.arctan(x)                       # small-input fast path

    # Lane-dense 2D view; pad only to a multiple of 128 lanes (usually a no-op).
    rows = pl.cdiv(n, _LANES)
    pad = rows * _LANES - n
    flat = x.reshape(-1)
    if pad:
        flat = jnp.pad(flat, (0, pad))             # arctan(0) = 0: padding is harmless
    x2d = flat.reshape(rows, _LANES)

    # Clamp the block to the array; Pallas handles the ragged last block.
    tile_rows = max(_SUBLANES, (tile_rows // _SUBLANES) * _SUBLANES)
    if rows <= tile_rows:
        tile_rows = rows                           # full-extent block: no (8,128) constraint
    grid = (pl.cdiv(rows, tile_rows),)

    out2d = pl.pallas_call(
        _arctan_kernel,
        out_shape=jax.ShapeDtypeStruct((rows, _LANES), orig_dtype),
        grid=grid,
        in_specs=[pl.BlockSpec((tile_rows, _LANES), lambda i: (i, 0))],
        out_specs=pl.BlockSpec((tile_rows, _LANES), lambda i: (i, 0)),
        compiler_params=pltpu.CompilerParams(
            dimension_semantics=("parallel",),     # shard grid across TCs (v7x megacore)
            vmem_limit_bytes=_VMEM_LIMIT_BYTES,
        ),
        cost_estimate=pl.CostEstimate(
            flops=30 * rows * _LANES,
            transcendentals=rows * _LANES,
            bytes_accessed=2 * rows * _LANES * orig_dtype.itemsize,
        ),
    )(x2d)

    if pad:
        return out2d.reshape(-1)[:n].reshape(orig_shape)
    return out2d.reshape(orig_shape)


if __name__ == "__main__":
    key = jax.random.PRNGKey(0)
    k1, k2, k3 = jax.random.split(key, 3)

    # (1) Module-consistent small NCHW input -> small-input fallback path.
    x_small = jax.random.normal(k1, (2, 4, 16, 16), dtype=jnp.float32) * 3.0
    y_small = arctan_pallas(x_small)

    # (2) Same input forced through the Pallas kernel (no padding, single block).
    y_small_k = arctan_pallas(x_small, force_pallas=True)

    # (3) Medium f32 input: default Pallas path, 2 grid steps (last one ragged).
    x_med = jax.random.normal(k2, (8, 16, 72, 64), dtype=jnp.float32) * 10.0
    y_med = arctan_pallas(x_med)

    # (4) bf16 input: exercises the in-kernel upcast/downcast path.
    x_bf16 = x_med.astype(jnp.bfloat16)
    y_bf16 = arctan_pallas(x_bf16)

    # (5) Odd-sized input (n % 128 != 0): exercises the lane-padding path.
    x_odd = jax.random.normal(k3, (3, 5, 7, 11), dtype=jnp.float32) * 2.0
    y_odd = arctan_pallas(x_odd, force_pallas=True)

    jax.block_until_ready((y_small, y_small_k, y_med, y_bf16, y_odd))

    for y, x in ((y_small, x_small), (y_small_k, x_small),
                 (y_med, x_med), (y_odd, x_odd)):
        assert y.shape == x.shape and y.dtype == x.dtype
        assert float(jnp.max(jnp.abs(y - jnp.arctan(x)))) < 1e-5

    assert y_bf16.shape == x_bf16.shape and y_bf16.dtype == x_bf16.dtype
    bf16_err = float(jnp.max(jnp.abs(y_bf16.astype(jnp.float32)
                                     - jnp.arctan(x_bf16).astype(jnp.float32))))
    assert bf16_err < 2e-2

    print("KERNEL_OK")
</pallas_src>

<mosaic_0001>
module attributes {stable_mosaic.version = 11 : i64} {
  func.func @_arctan_kernel(%arg0: i32, %arg1: memref<16x128xf32, #tpu.memory_space<vmem>>, %arg2: memref<16x128xf32, #tpu.memory_space<vmem>>) attributes {dimension_semantics = [#tpu.dimension_semantics<parallel>], iteration_bounds = array<i64: 1>, scalar_prefetch = 0 : i64, scratch_operands = 0 : i64, tpu.core_type = #tpu.core_type<tc>, window_params = [{transform_indices = @transform_0, window_bounds = array<i64: 16, 128>}, {transform_indices = @transform_1, window_bounds = array<i64: 16, 128>}]} {
    %c0 = arith.constant 0 : index
    %c0_0 = arith.constant 0 : index
    %0 = vector.load %arg1[%c0, %c0_0] : memref<16x128xf32, #tpu.memory_space<vmem>>, vector<16x128xf32>
    %1 = math.absf %0 : vector<16x128xf32>
    %cst = arith.constant 9.99999968E+37 : f32
    %2 = vector.broadcast %cst : f32 to vector<16x128xf32>
    %3 = arith.minimumf %1, %2 : vector<16x128xf32>
    %cst_1 = arith.constant 2.41421366 : f32
    %4 = vector.broadcast %cst_1 : f32 to vector<16x128xf32>
    %5 = arith.cmpf ogt, %3, %4 : vector<16x128xf32>
    %cst_2 = arith.constant 0.414213568 : f32
    %6 = vector.broadcast %cst_2 : f32 to vector<16x128xf32>
    %7 = arith.cmpf ogt, %3, %6 : vector<16x128xf32>
    %cst_3 = arith.constant 1.000000e+00 : f32
    %8 = vector.broadcast %cst_3 : f32 to vector<16x128xf32>
    %9 = arith.subf %3, %8 : vector<16x128xf32>
    %10 = arith.select %7, %9, %3 : vector<16x128xi1>, vector<16x128xf32>
    %cst_4 = arith.constant -1.000000e+00 : f32
    %11 = vector.broadcast %cst_4 : f32 to vector<16x128xf32>
    %12 = arith.select %5, %11, %10 : vector<16x128xi1>, vector<16x128xf32>
    %cst_5 = arith.constant 1.000000e+00 : f32
    %13 = vector.broadcast %cst_5 : f32 to vector<16x128xf32>
    %14 = arith.addf %3, %13 : vector<16x128xf32>
    %cst_6 = arith.constant 1.000000e+00 : f32
    %15 = vector.broadcast %cst_6 : f32 to vector<16x128xf32>
    %16 = arith.select %7, %14, %15 : vector<16x128xi1>, vector<16x128xf32>
    %17 = arith.select %5, %3, %16 : vector<16x128xi1>, vector<16x128xf32>
    %18 = tpu.reciprocal %17 {approx = true} : vector<16x128xf32> -> vector<16x128xf32>
    %19 = arith.mulf %17, %18 : vector<16x128xf32>
    %cst_7 = arith.constant 2.000000e+00 : f32
    %20 = vector.broadcast %cst_7 : f32 to vector<16x128xf32>
    %21 = arith.subf %20, %19 : vector<16x128xf32>
    %22 = arith.mulf %18, %21 : vector<16x128xf32>
    %23 = arith.mulf %17, %22 : vector<16x128xf32>
    %cst_8 = arith.constant 2.000000e+00 : f32
    %24 = vector.broadcast %cst_8 : f32 to vector<16x128xf32>
    %25 = arith.subf %24, %23 : vector<16x128xf32>
    %26 = arith.mulf %22, %25 : vector<16x128xf32>
    %27 = arith.mulf %12, %26 : vector<16x128xf32>
    %cst_9 = arith.constant 0.785398185 : f32
    %cst_10 = arith.constant 0.000000e+00 : f32
    %28 = vector.broadcast %cst_9 : f32 to vector<16x128xf32>
    %29 = vector.broadcast %cst_10 : f32 to vector<16x128xf32>
    %30 = arith.select %7, %28, %29 : vector<16x128xi1>, vector<16x128xf32>
    %cst_11 = arith.constant 1.57079637 : f32
    %31 = vector.broadcast %cst_11 : f32 to vector<16x128xf32>
    %32 = arith.select %5, %31, %30 : vector<16x128xi1>, vector<16x128xf32>
    %33 = arith.mulf %27, %27 : vector<16x128xf32>
    %cst_12 = arith.constant 0.0805374458 : f32
    %34 = vector.broadcast %cst_12 : f32 to vector<16x128xf32>
    %35 = arith.mulf %34, %33 : vector<16x128xf32>
    %cst_13 = arith.constant -0.138776854 : f32
    %36 = vector.broadcast %cst_13 : f32 to vector<16x128xf32>
    %37 = arith.addf %35, %36 : vector<16x128xf32>
    %38 = arith.mulf %37, %33 : vector<16x128xf32>
    %cst_14 = arith.constant 0.199777111 : f32
    %39 = vector.broadcast %cst_14 : f32 to vector<16x128xf32>
    %40 = arith.addf %38, %39 : vector<16x128xf32>
    %41 = arith.mulf %40, %33 : vector<16x128xf32>
    %cst_15 = arith.constant -0.333329499 : f32
    %42 = vector.broadcast %cst_15 : f32 to vector<16x128xf32>
    %43 = arith.addf %41, %42 : vector<16x128xf32>
    %44 = arith.mulf %43, %33 : vector<16x128xf32>
    %45 = arith.mulf %44, %27 : vector<16x128xf32>
    %46 = arith.addf %45, %27 : vector<16x128xf32>
    %47 = arith.addf %32, %46 : vector<16x128xf32>
    %cst_16 = arith.constant 0.000000e+00 : f32
    %48 = vector.broadcast %cst_16 : f32 to vector<16x128xf32>
    %49 = arith.cmpf olt, %0, %48 : vector<16x128xf32>
    %cst_17 = arith.constant 0.000000e+00 : f32
    %50 = vector.broadcast %cst_17 : f32 to vector<16x128xf32>
    %51 = arith.subf %50, %47 : vector<16x128xf32>
    %52 = arith.select %49, %51, %47 : vector<16x128xi1>, vector<16x128xf32>
    %53 = arith.cmpf one, %0, %0 : vector<16x128xf32>
    %54 = arith.select %53, %0, %52 : vector<16x128xi1>, vector<16x128xf32>
    %c0_18 = arith.constant 0 : index
    %c0_19 = arith.constant 0 : index
    %55 = vector.load %arg2[%c0_18, %c0_19] : memref<16x128xf32, #tpu.memory_space<vmem>>, vector<16x128xf32>
    tpu.vector_store %arg2[%c0_18, %c0_19], %54 {strides = array<i32>} : memref<16x128xf32, #tpu.memory_space<vmem>>, vector<16x128xf32>,
    return
  }
  func.func @transform_0(%arg0: i32) -> (i32, i32) {
    %c0_i32 = arith.constant 0 : i32
    %c0_i32_0 = arith.constant 0 : i32
    return %arg0, %c0_i32 : i32, i32
  }
  func.func @transform_1(%arg0: i32) -> (i32, i32) {
    %c0_i32 = arith.constant 0 : i32
    %c0_i32_0 = arith.constant 0 : i32
    return %arg0, %c0_i32 : i32, i32
  }
}

</mosaic_0001>

<bundles_post_ra>
// kernel: tpu_custom_call.1
= control target key start
LH: loop header
LB: loop body
LE: loop exit
PB: predicated region body
PF: predicated region fallthrough
CT: control target
= control target key end

     0   :  { %6 = vsyncpa [#allocation3], 0  ;;  %s224_s0 = inlined_call_operand.hbm [shape: f32[16,128], index: 0, kind: input, shape index: {}]   ;;  %s225_s1 = inlined_call_operand.hbm [shape: f32[16,128], index: 1, kind: output, shape index: {}]  }
   0x1   :  { %7 = vsyncpa [#allocation4], 0  ;;  %s171_s6 = smov [#allocation2]  }
   0x2   :  { %s13_s7 = sshll.u32 %s171_s6, 4  ;;  %s14_s7 = int_to_ptr.vmem [resolvable:$true] %s13_s7 }
   0x3   :  { %s135_s8 = scalar_lea.vmem %s14_s7, 256  ;;  %p140_p1 = scmp.lt.s32.totalorder %s14_s7, %s14_s7 }
   0x4   :  { %p136_p0 = scmp.ne.s32.totalorder %s14_s7, %s135_s8  ;;  %p141_p2 = scmp.lt.s32.totalorder %s135_s8, %s135_s8 }
   0x6   :  { %p142_p3 = por %p141_p2, %p140_p1 }
   0x8   :  { %p143_p4 = pnand %p142_p3, %p136_p0 }
   0xa   :  { %146 = shalt.err (!%p143_p4)
}
   0xb   :  { %s172_s9 = smov 128   ;;  %s173_s10 = smov 8  }
   0xc   :  { %19 = dma.hbm_to_vmem [thread:$0]  %s224_s0, 256, %s14_s7, [#allocation3], %s172_s9, %s172_s9, %s173_s10  }
   0xd   :  { %167 = dma.done.wait [#allocation3], 256  }
   0xe   :  { %168 = vsyncadd [#allocation3], 4294967040  ;;  %v192_v0 = vld [vmem:[#allocation2] sm:$0xff]  ;;  %v194_v1 = vld [vmem:[#allocation2 + $0x8] sm:$0xff]  ;;  %v174_v47 = vmov 0.0   ;;  %s175_s0 = smov [#allocation5]  }
   0xf   :  { %v25_v2 = vand.u32 2147483647, %v192_v0  ;;  %v26_v3 = vand.u32 2147483647, %v194_v1  ;;  %vm87_vm4 = vcmp.lt.f32.partialorder %v192_v0, 0.0  ;;  %vm93_vm5 = vcmp.ne.f32.partialorder %v192_v0, %v192_v0  ;;  %s104_s13 = sshll.u32 %s175_s0, 4  ;;  %s105_s13 = int_to_ptr.vmem [resolvable:$true] %s104_s13 }
  0x10   :  { %vm88_vm6 = vcmp.lt.f32.partialorder %v194_v1, 0.0  ;;  %vm94_vm7 = vcmp.ne.f32.partialorder %v194_v1, %v194_v1  ;;  %s147_s14 = scalar_lea.vmem %s105_s13, 256  ;;  %p152_p6 = scmp.lt.s32.totalorder %s105_s13, %s105_s13 }
  0x11   :  { %v27_v4 = vmin.f32 %v25_v2, 1e+38  ;;  %v28_v5 = vmin.f32 %v26_v3, 1e+38  ;;  %p148_p5 = scmp.ne.s32.totalorder %s105_s13, %s147_s14  ;;  %p153_p7 = scmp.lt.s32.totalorder %s147_s14, %s147_s14 }
  0x13   :  { %vm29_vm0 = vcmp.gt.f32.partialorder %v27_v4, 2.4142137  ;;  %vm31_vm1 = vcmp.gt.f32.partialorder %v27_v4, 0.41421357  ;;  %v39_v6 = vadd.f32 1.0, %v27_v4  ;;  %v40_v9 = vadd.f32 1.0, %v28_v5  ;;  %p154_p8 = por %p153_p7, %p152_p6 }
  0x14   :  { %vm32_vm2 = vcmp.gt.f32.partialorder %v28_v5, 0.41421357  ;;  %vm30_vm3 = vcmp.gt.f32.partialorder %v28_v5, 2.4142137  ;;  %v116_v15 = vadd.f32 -1.0, %v27_v4  ;;  %v117_v19 = vadd.f32 -1.0, %v28_v5 }
  0x15   :  { %v41_v7 = vsel %vm31_vm1, %v39_v6, 1.0  ;;  %v42_v10 = vsel %vm32_vm2, %v40_v9, 1.0  ;;  %v61_v48 = vsel %vm31_vm1, 0.7853982, %v174_v47  ;;  %v62_v53 = vsel %vm32_vm2, 0.7853982, %v174_v47  ;;  %p155_p9 = pnand %p154_p8, %p148_p5 }
  0x16   :  { %v43_v8 = vsel %vm29_vm0, %v27_v4, %v41_v7  ;;  %v44_v11 = vsel %vm30_vm3, %v28_v5, %v42_v10  ;;  %v35_v21 = vsel %vm31_vm1, %v116_v15, %v27_v4  ;;  %v36_v26 = vsel %vm32_vm2, %v117_v19, %v28_v5 }
  0x17   :  { %123 = vrcp.f32 %v43_v8  ;;  %v37_v25 = vsel %vm29_vm0, -1.0, %v35_v21  ;;  %v38_v31 = vsel %vm30_vm3, -1.0, %v36_v26  ;;  %v63_v52 = vsel %vm29_vm0, 1.5707964, %v61_v48 }
  0x18   :  { %125 = vrcp.f32 %v44_v11  ;;  %v64_v58 = vsel %vm30_vm3, 1.5707964, %v62_v53 }
  0x24   :  { %v124_v12 = vpop.eup %123 }
  0x25   :  { %v47_v13 = vmul.f32 %v124_v12, %v43_v8  ;;  %v126_v14 = vpop.eup %125 }
  0x26   :  { %v48_v17 = vmul.f32 %v126_v14, %v44_v11 }
  0x27   :  { %v49_v16 = vsub.f32 2.0, %v47_v13 }
  0x28   :  { %v50_v20 = vsub.f32 2.0, %v48_v17 }
  0x29   :  { %v51_v18 = vmul.f32 %v124_v12, %v49_v16 }
  0x2a   :  { %v52_v23 = vmul.f32 %v126_v14, %v50_v20 }
  0x2b   :  { %v53_v22 = vmul.f32 %v51_v18, %v43_v8 }
  0x2c   :  { %v54_v27 = vmul.f32 %v52_v23, %v44_v11 }
  0x2d   :  { %v55_v24 = vsub.f32 2.0, %v53_v22 }
  0x2e   :  { %v56_v29 = vsub.f32 2.0, %v54_v27 }
  0x2f   :  { %v57_v28 = vmul.f32 %v55_v24, %v51_v18 }
  0x30   :  { %v58_v32 = vmul.f32 %v56_v29, %v52_v23 }
  0x31   :  { %v59_v30 = vmul.f32 %v57_v28, %v37_v25 }
  0x32   :  { %v60_v34 = vmul.f32 %v58_v32, %v38_v31 }
  0x33   :  { %v65_v33 = vmul.f32 %v59_v30, %v59_v30 }
  0x34   :  { %v66_v36 = vmul.f32 %v60_v34, %v60_v34 }
  0x35   :  { %v67_v35 = vmul.f32 0.080537446, %v65_v33 }
  0x36   :  { %v68_v38 = vmul.f32 0.080537446, %v66_v36 }
  0x37   :  { %v69_v37 = vadd.f32 -0.13877685, %v67_v35 }
  0x38   :  { %v70_v40 = vadd.f32 -0.13877685, %v68_v38 }
  0x39   :  { %v71_v39 = vmul.f32 %v69_v37, %v65_v33 }
  0x3a   :  { %v72_v42 = vmul.f32 %v70_v40, %v66_v36 }
  0x3b   :  { %v73_v41 = vadd.f32 0.19977711, %v71_v39 }
  0x3c   :  { %v74_v44 = vadd.f32 0.19977711, %v72_v42 }
  0x3d   :  { %v75_v43 = vmul.f32 %v73_v41, %v65_v33 }
  0x3e   :  { %v76_v46 = vmul.f32 %v74_v44, %v66_v36 }
  0x3f   :  { %v77_v45 = vadd.f32 -0.3333295, %v75_v43 }
  0x40   :  { %v78_v50 = vadd.f32 -0.3333295, %v76_v46 }
  0x41   :  { %v79_v49 = vmul.f32 %v77_v45, %v65_v33 }
  0x42   :  { %v80_v54 = vmul.f32 %v78_v50, %v66_v36 }
  0x43   :  { %v81_v51 = vmul.f32 %v79_v49, %v59_v30 }
  0x44   :  { %v82_v56 = vmul.f32 %v80_v54, %v60_v34 }
  0x45   :  { %v83_v55 = vadd.f32 %v81_v51, %v59_v30 }
  0x46   :  { %v84_v59 = vadd.f32 %v82_v56, %v60_v34 }
  0x47   :  { %v85_v57 = vadd.f32 %v83_v55, %v63_v52 }
  0x48   :  { %v86_v61 = vadd.f32 %v84_v59, %v64_v58 }
  0x49   :  { %v89_v60 = vsub.f32 0.0, %v85_v57 }
  0x4a   :  { %v90_v2 = vsub.f32 0.0, %v86_v61 }
  0x4b   :  { %v91_v62 = vsel %vm87_vm4, %v89_v60, %v85_v57 }
  0x4c   :  { %v95_v63 = vsel %vm93_vm5, %v192_v0, %v91_v62  ;;  %v92_v3 = vsel %vm88_vm6, %v90_v2, %v86_v61 }
  0x4d   :  { %97 = vst [vmem:[#allocation5] sm:$0xff] %v95_v63  ;;  %v96_v4 = vsel %vm94_vm7, %v194_v1, %v92_v3 }
  0x4e   :  { %98 = vst [vmem:[#allocation5 + $0x8] sm:$0xff] %v96_v4 }
  0x4f   :  { %158 = shalt.err (!%p155_p9)
}
  0x50   :  { %110 = dma.vmem_to_hbm [thread:$0]  %s105_s13, 256, %s225_s1, [#allocation4], %s172_s9, %s172_s9, %s173_s10  }
  0x51   :  { %169 = dma.done.wait [#allocation4], 256  }
  0x52   :  { %170 = vsyncadd [#allocation4], 4294967040 }
  0x53   :  { %114 = vsyncpa [#allocation3], 1 }
  0x54   :  { %115 = vsyncpa [#allocation4], 1 }

</bundles_post_ra>
